<compile_context>
chip_gen: v6e
topology: v6e:2x2x1
jax: 0.10.0
libtpu: 0.0.40
codegen_flags: <defaults>
</compile_context>

<pallas_src>
import functools
import math

import jax
import jax.numpy as jnp
from jax import lax
from jax.experimental import pallas as pl
from jax.experimental.pallas import tpu as pltpu


def _speaker_encoder_kernel(ids_ref, pe_ref, emb_ref, out_ref, *, use_select):
    # ids_ref : (tnk, k)    int32 -- k original rows folded per store row
    # pe_ref  : (tnk, k*D)  f32   -- folded positional-encoding tile (reused over batch)
    # emb_ref : (S, D)      f32   -- full embedding table, resident across grid steps
    # out_ref : (tnk, k*D)  f32   -- lane-dense output tile
    S, D = emb_ref.shape
    tnk, k = ids_ref.shape

    ids = ids_ref[...]                                   # (tnk, k) int32

    for c in range(k):                                   # static, small (k = 128//D or 1)
        idc = ids[:, c : c + 1]                          # (tnk, 1)
        acc = pe_ref[:, c * D : (c + 1) * D]             # (tnk, D) -- fused PE add

        if use_select:
            # Exact VPU select-accumulate: no MXU, bit-exact in f32.
            for s in range(S):
                mask = (idc == s).astype(jnp.float32)    # (tnk, 1) of {0.0, 1.0}
                acc = acc + mask * emb_ref[s : s + 1, :]  # (tnk,1)*(1,D) -> (tnk,D)
        else:
            # One-hot MXU matmul for larger S; HIGHEST precision for exact selection.
            iota = lax.broadcasted_iota(jnp.int32, (tnk, S), 1)
            onehot = (iota == idc).astype(jnp.float32)   # (tnk, S)
            acc = acc + jnp.dot(onehot, emb_ref[...],
                                preferred_element_type=jnp.float32,
                                precision=lax.Precision.HIGHEST)

        out_ref[:, c * D : (c + 1) * D] = acc


def _sinusoidal_pe(num_node, dim):
    """Batch-invariant sinusoidal PE, computed once on the XLA side (even dim)."""
    position = jnp.arange(num_node, dtype=jnp.float32)[:, None]           # (N, 1)
    div_term = jnp.exp(jnp.arange(0, dim, 2, dtype=jnp.float32)
                       * (-math.log(10000.0) / dim))                      # (D//2,)
    pe = jnp.zeros((num_node, dim), jnp.float32)
    pe = pe.at[:, 0::2].set(jnp.sin(position * div_term))
    pe = pe.at[:, 1::2].set(jnp.cos(position * div_term))
    return pe


def _pick_row_block(n_rows, max_rows):
    """Largest row block <= max_rows that divides n_rows and keeps (8,128) legal."""
    if n_rows <= max_rows:
        return n_rows                                    # full extent: always legal
    for tn in range(min(max_rows, n_rows), 7, -1):
        if n_rows % tn == 0 and tn % 8 == 0:
            return tn
    # TODO(synk): ragged-tail masking for awkward (e.g. prime) row counts; fall
    # back to a single full-extent block, which is correct but may be large.
    return n_rows


def speaker_encoder(speaker_ids, emb_table, *, row_block=None):
    """speaker_ids: (B, N) int, emb_table: (S, D) f32 -> (B, N, D) f32."""
    B, N = speaker_ids.shape
    S, D = emb_table.shape
    assert D % 2 == 0, "SpeakerEncoder requires an even embedding dim"

    # Lane-dense fold: pack k = 128//D consecutive rows into one 128-lane-multiple
    # store row (contiguous reshapes only; no data movement on the wrapper side).
    if D < 128 and 128 % D == 0 and N % (128 // D) == 0:
        k = 128 // D
    else:
        k = 1
    Nk, Dk = N // k, k * D

    pe = _sinusoidal_pe(N, D).reshape(Nk, Dk)                       # (Nk, Dk), no batch bcast
    ids = speaker_ids.astype(jnp.int32).reshape(B, Nk, k)           # (B, Nk, k)
    emb = emb_table.astype(jnp.float32)

    # Row-block sizing: target ~2 MiB per streamed tile (amortizes ~0.35us/step
    # and saturates HBM), chosen as a divisor of Nk so no pad / slice copies.
    if row_block is None:
        target = max(8, (2 * 1024 * 1024) // (Dk * 4))
    else:
        target = max(1, row_block // k)
    tnk = _pick_row_block(Nk, target)
    n_row_blocks = Nk // tnk

    # VMEM budget: double-buffered pe/ids/out tiles + resident table.  Only raise
    # the scoped limit when the estimate exceeds the conservative default.
    # TODO(synk): for very large tables (S*D*4 near the v7x 64 MiB VMEM), keep the
    # table in HBM (pl.ANY) and DMA-gather rows via scalar-prefetched ids instead.
    est_vmem = 2 * (tnk * Dk * 4 + tnk * k * 4 + tnk * Dk * 4) + S * D * 4
    cparams = {"dimension_semantics": ("parallel", "arbitrary")}
    if est_vmem > 12 * 1024 * 1024:
        cparams["vmem_limit_bytes"] = min(2 * est_vmem, 96 * 1024 * 1024)

    kernel = functools.partial(_speaker_encoder_kernel, use_select=(S <= 16))

    out = pl.pallas_call(
        kernel,
        out_shape=jax.ShapeDtypeStruct((B, Nk, Dk), jnp.float32),
        grid_spec=pltpu.PrefetchScalarGridSpec(
            num_scalar_prefetch=0,
            # batch is the INNER grid axis: the PE block index is constant across
            # it, so each PE tile is DMA'd once per row block (reused over batch).
            grid=(n_row_blocks, B),
            in_specs=[
                pl.BlockSpec((None, tnk, k), lambda r, b: (b, r, 0)),   # ids block
                pl.BlockSpec((tnk, Dk), lambda r, b: (r, 0)),           # PE (batch-invariant)
                pl.BlockSpec((S, D), lambda r, b: (0, 0)),              # table, resident
            ],
            out_specs=pl.BlockSpec((None, tnk, Dk), lambda r, b: (b, r, 0)),
        ),
        compiler_params=pltpu.CompilerParams(**cparams),
    )(ids, pe, emb)

    return out.reshape(B, N, D)


def speaker_encoder_ref(speaker_ids, emb_table):
    """Pure-JAX reference mirroring the PyTorch forward."""
    _, N = speaker_ids.shape
    _, D = emb_table.shape
    emb = emb_table[speaker_ids]                                  # (B, N, D)
    pe = _sinusoidal_pe(N, D)
    return emb + pe[None, :, :]


if __name__ == "__main__":
    B, N = 2, 8          # batch, num_node (sequence of speaker ids)
    S, D = 4, 32         # n_speakers, dim

    key = jax.random.PRNGKey(0)
    k_ids, k_emb = jax.random.split(key)
    speaker_ids = jax.random.randint(k_ids, (B, N), 0, S, dtype=jnp.int32)
    emb_table = jax.random.normal(k_emb, (S, D), dtype=jnp.float32)

    out = speaker_encoder(speaker_ids, emb_table)
    out = jax.block_until_ready(out)

    ref = speaker_encoder_ref(speaker_ids, emb_table)
    assert out.shape == (B, N, D)
    assert jnp.allclose(out, ref, atol=1e-5, rtol=1e-5), "mismatch vs reference"

    print("KERNEL_OK")
</pallas_src>

<mosaic_0001>
module attributes {stable_mosaic.version = 11 : i64} {
  func.func @_speaker_encoder_kernel(%arg0: i32, %arg1: i32, %arg2: memref<1x2x4xi32, #tpu.memory_space<vmem>>, %arg3: memref<2x128xf32, #tpu.memory_space<vmem>>, %arg4: memref<4x32xf32, #tpu.memory_space<vmem>>, %arg5: memref<1x2x128xf32, #tpu.memory_space<vmem>>) attributes {dimension_semantics = [#tpu.dimension_semantics<parallel>, #tpu.dimension_semantics<arbitrary>], iteration_bounds = array<i64: 1, 2>, scalar_prefetch = 0 : i64, scratch_operands = 0 : i64, tpu.core_type = #tpu.core_type<tc>, window_params = [{transform_indices = @transform_0, window_bounds = array<i64: 1, 2, 4>}, {transform_indices = @transform_1, window_bounds = array<i64: 2, 128>}, {pipeline_mode = #tpu.pipeline_mode<synchronous>, transform_indices = @transform_2, window_bounds = array<i64: 4, 32>}, {transform_indices = @transform_3, window_bounds = array<i64: 1, 2, 128>}]} {
    %c0 = arith.constant 0 : index
    %c0_0 = arith.constant 0 : index
    %c0_1 = arith.constant 0 : index
    %0 = vector.load %arg2[%c0, %c0_0, %c0_1] : memref<1x2x4xi32, #tpu.memory_space<vmem>>, vector<1x2x4xi32>
    %1 = vector.shape_cast %0 : vector<1x2x4xi32> to vector<2x4xi32>
    %2 = vector.extract_strided_slice %1 {offsets = [0, 0], sizes = [2, 1], strides = [1, 1]} : vector<2x4xi32> to vector<2x1xi32>
    %c0_2 = arith.constant 0 : index
    %c0_3 = arith.constant 0 : index
    %3 = vector.load %arg3[%c0_2, %c0_3] : memref<2x128xf32, #tpu.memory_space<vmem>>, vector<2x32xf32>
    %c0_i32 = arith.constant 0 : i32
    %4 = vector.broadcast %c0_i32 : i32 to vector<2x1xi32>
    %5 = arith.cmpi eq, %2, %4 : vector<2x1xi32>
    %6 = arith.extui %5 : vector<2x1xi1> to vector<2x1xi32>
    %7 = arith.sitofp %6 : vector<2x1xi32> to vector<2x1xf32>
    %c0_4 = arith.constant 0 : index
    %c0_5 = arith.constant 0 : index
    %8 = vector.load %arg4[%c0_4, %c0_5] : memref<4x32xf32, #tpu.memory_space<vmem>>, vector<1x32xf32>
    %9 = vector.broadcast %7 : vector<2x1xf32> to vector<2x32xf32>
    %10 = vector.broadcast %8 : vector<1x32xf32> to vector<2x32xf32>
    %11 = arith.mulf %9, %10 : vector<2x32xf32>
    %12 = arith.addf %3, %11 : vector<2x32xf32>
    %c1_i32 = arith.constant 1 : i32
    %13 = vector.broadcast %c1_i32 : i32 to vector<2x1xi32>
    %14 = arith.cmpi eq, %2, %13 : vector<2x1xi32>
    %15 = arith.extui %14 : vector<2x1xi1> to vector<2x1xi32>
    %16 = arith.sitofp %15 : vector<2x1xi32> to vector<2x1xf32>
    %c1 = arith.constant 1 : index
    %c0_6 = arith.constant 0 : index
    %17 = vector.load %arg4[%c1, %c0_6] : memref<4x32xf32, #tpu.memory_space<vmem>>, vector<1x32xf32>
    %18 = vector.broadcast %16 : vector<2x1xf32> to vector<2x32xf32>
    %19 = vector.broadcast %17 : vector<1x32xf32> to vector<2x32xf32>
    %20 = arith.mulf %18, %19 : vector<2x32xf32>
    %21 = arith.addf %12, %20 : vector<2x32xf32>
    %c2_i32 = arith.constant 2 : i32
    %22 = vector.broadcast %c2_i32 : i32 to vector<2x1xi32>
    %23 = arith.cmpi eq, %2, %22 : vector<2x1xi32>
    %24 = arith.extui %23 : vector<2x1xi1> to vector<2x1xi32>
    %25 = arith.sitofp %24 : vector<2x1xi32> to vector<2x1xf32>
    %c2 = arith.constant 2 : index
    %c0_7 = arith.constant 0 : index
    %26 = vector.load %arg4[%c2, %c0_7] : memref<4x32xf32, #tpu.memory_space<vmem>>, vector<1x32xf32>
    %27 = vector.broadcast %25 : vector<2x1xf32> to vector<2x32xf32>
    %28 = vector.broadcast %26 : vector<1x32xf32> to vector<2x32xf32>
    %29 = arith.mulf %27, %28 : vector<2x32xf32>
    %30 = arith.addf %21, %29 : vector<2x32xf32>
    %c3_i32 = arith.constant 3 : i32
    %31 = vector.broadcast %c3_i32 : i32 to vector<2x1xi32>
    %32 = arith.cmpi eq, %2, %31 : vector<2x1xi32>
    %33 = arith.extui %32 : vector<2x1xi1> to vector<2x1xi32>
    %34 = arith.sitofp %33 : vector<2x1xi32> to vector<2x1xf32>
    %c3 = arith.constant 3 : index
    %c0_8 = arith.constant 0 : index
    %35 = vector.load %arg4[%c3, %c0_8] : memref<4x32xf32, #tpu.memory_space<vmem>>, vector<1x32xf32>
    %36 = vector.broadcast %34 : vector<2x1xf32> to vector<2x32xf32>
    %37 = vector.broadcast %35 : vector<1x32xf32> to vector<2x32xf32>
    %38 = arith.mulf %36, %37 : vector<2x32xf32>
    %39 = arith.addf %30, %38 : vector<2x32xf32>
    %c0_9 = arith.constant 0 : index
    %c0_10 = arith.constant 0 : index
    %c0_11 = arith.constant 0 : index
    %40 = vector.load %arg5[%c0_9, %c0_10, %c0_11] : memref<1x2x128xf32, #tpu.memory_space<vmem>>, vector<1x2x32xf32>
    %41 = vector.shape_cast %40 : vector<1x2x32xf32> to vector<2x32xf32>
    %42 = vector.shape_cast %39 : vector<2x32xf32> to vector<1x2x32xf32>
    tpu.vector_store %arg5[%c0_9, %c0_10, %c0_11], %42 {strides = array<i32>} : memref<1x2x128xf32, #tpu.memory_space<vmem>>, vector<1x2x32xf32>,
    %43 = vector.extract_strided_slice %1 {offsets = [0, 1], sizes = [2, 1], strides = [1, 1]} : vector<2x4xi32> to vector<2x1xi32>
    %c0_12 = arith.constant 0 : index
    %c32 = arith.constant 32 : index
    %44 = vector.load %arg3[%c0_12, %c32] : memref<2x128xf32, #tpu.memory_space<vmem>>, vector<2x32xf32>
    %c0_i32_13 = arith.constant 0 : i32
    %45 = vector.broadcast %c0_i32_13 : i32 to vector<2x1xi32>
    %46 = arith.cmpi eq, %43, %45 : vector<2x1xi32>
    %47 = arith.extui %46 : vector<2x1xi1> to vector<2x1xi32>
    %48 = arith.sitofp %47 : vector<2x1xi32> to vector<2x1xf32>
    %c0_14 = arith.constant 0 : index
    %c0_15 = arith.constant 0 : index
    %49 = vector.load %arg4[%c0_14, %c0_15] : memref<4x32xf32, #tpu.memory_space<vmem>>, vector<1x32xf32>
    %50 = vector.broadcast %48 : vector<2x1xf32> to vector<2x32xf32>
    %51 = vector.broadcast %49 : vector<1x32xf32> to vector<2x32xf32>
    %52 = arith.mulf %50, %51 : vector<2x32xf32>
    %53 = arith.addf %44, %52 : vector<2x32xf32>
    %c1_i32_16 = arith.constant 1 : i32
    %54 = vector.broadcast %c1_i32_16 : i32 to vector<2x1xi32>
    %55 = arith.cmpi eq, %43, %54 : vector<2x1xi32>
    %56 = arith.extui %55 : vector<2x1xi1> to vector<2x1xi32>
    %57 = arith.sitofp %56 : vector<2x1xi32> to vector<2x1xf32>
    %c1_17 = arith.constant 1 : index
    %c0_18 = arith.constant 0 : index
    %58 = vector.load %arg4[%c1_17, %c0_18] : memref<4x32xf32, #tpu.memory_space<vmem>>, vector<1x32xf32>
    %59 = vector.broadcast %57 : vector<2x1xf32> to vector<2x32xf32>
    %60 = vector.broadcast %58 : vector<1x32xf32> to vector<2x32xf32>
    %61 = arith.mulf %59, %60 : vector<2x32xf32>
    %62 = arith.addf %53, %61 : vector<2x32xf32>
    %c2_i32_19 = arith.constant 2 : i32
    %63 = vector.broadcast %c2_i32_19 : i32 to vector<2x1xi32>
    %64 = arith.cmpi eq, %43, %63 : vector<2x1xi32>
    %65 = arith.extui %64 : vector<2x1xi1> to vector<2x1xi32>
    %66 = arith.sitofp %65 : vector<2x1xi32> to vector<2x1xf32>
    %c2_20 = arith.constant 2 : index
    %c0_21 = arith.constant 0 : index
    %67 = vector.load %arg4[%c2_20, %c0_21] : memref<4x32xf32, #tpu.memory_space<vmem>>, vector<1x32xf32>
    %68 = vector.broadcast %66 : vector<2x1xf32> to vector<2x32xf32>
    %69 = vector.broadcast %67 : vector<1x32xf32> to vector<2x32xf32>
    %70 = arith.mulf %68, %69 : vector<2x32xf32>
    %71 = arith.addf %62, %70 : vector<2x32xf32>
    %c3_i32_22 = arith.constant 3 : i32
    %72 = vector.broadcast %c3_i32_22 : i32 to vector<2x1xi32>
    %73 = arith.cmpi eq, %43, %72 : vector<2x1xi32>
    %74 = arith.extui %73 : vector<2x1xi1> to vector<2x1xi32>
    %75 = arith.sitofp %74 : vector<2x1xi32> to vector<2x1xf32>
    %c3_23 = arith.constant 3 : index
    %c0_24 = arith.constant 0 : index
    %76 = vector.load %arg4[%c3_23, %c0_24] : memref<4x32xf32, #tpu.memory_space<vmem>>, vector<1x32xf32>
    %77 = vector.broadcast %75 : vector<2x1xf32> to vector<2x32xf32>
    %78 = vector.broadcast %76 : vector<1x32xf32> to vector<2x32xf32>
    %79 = arith.mulf %77, %78 : vector<2x32xf32>
    %80 = arith.addf %71, %79 : vector<2x32xf32>
    %c0_25 = arith.constant 0 : index
    %c0_26 = arith.constant 0 : index
    %c32_27 = arith.constant 32 : index
    %81 = vector.load %arg5[%c0_25, %c0_26, %c32_27] : memref<1x2x128xf32, #tpu.memory_space<vmem>>, vector<1x2x32xf32>
    %82 = vector.shape_cast %81 : vector<1x2x32xf32> to vector<2x32xf32>
    %83 = vector.shape_cast %80 : vector<2x32xf32> to vector<1x2x32xf32>
    tpu.vector_store %arg5[%c0_25, %c0_26, %c32_27], %83 {strides = array<i32>} : memref<1x2x128xf32, #tpu.memory_space<vmem>>, vector<1x2x32xf32>,
    %84 = vector.extract_strided_slice %1 {offsets = [0, 2], sizes = [2, 1], strides = [1, 1]} : vector<2x4xi32> to vector<2x1xi32>
    %c0_28 = arith.constant 0 : index
    %c64 = arith.constant 64 : index
    %85 = vector.load %arg3[%c0_28, %c64] : memref<2x128xf32, #tpu.memory_space<vmem>>, vector<2x32xf32>
    %c0_i32_29 = arith.constant 0 : i32
    %86 = vector.broadcast %c0_i32_29 : i32 to vector<2x1xi32>
    %87 = arith.cmpi eq, %84, %86 : vector<2x1xi32>
    %88 = arith.extui %87 : vector<2x1xi1> to vector<2x1xi32>
    %89 = arith.sitofp %88 : vector<2x1xi32> to vector<2x1xf32>
    %c0_30 = arith.constant 0 : index
    %c0_31 = arith.constant 0 : index
    %90 = vector.load %arg4[%c0_30, %c0_31] : memref<4x32xf32, #tpu.memory_space<vmem>>, vector<1x32xf32>
    %91 = vector.broadcast %89 : vector<2x1xf32> to vector<2x32xf32>
    %92 = vector.broadcast %90 : vector<1x32xf32> to vector<2x32xf32>
    %93 = arith.mulf %91, %92 : vector<2x32xf32>
    %94 = arith.addf %85, %93 : vector<2x32xf32>
    %c1_i32_32 = arith.constant 1 : i32
    %95 = vector.broadcast %c1_i32_32 : i32 to vector<2x1xi32>
    %96 = arith.cmpi eq, %84, %95 : vector<2x1xi32>
    %97 = arith.extui %96 : vector<2x1xi1> to vector<2x1xi32>
    %98 = arith.sitofp %97 : vector<2x1xi32> to vector<2x1xf32>
    %c1_33 = arith.constant 1 : index
    %c0_34 = arith.constant 0 : index
    %99 = vector.load %arg4[%c1_33, %c0_34] : memref<4x32xf32, #tpu.memory_space<vmem>>, vector<1x32xf32>
    %100 = vector.broadcast %98 : vector<2x1xf32> to vector<2x32xf32>
    %101 = vector.broadcast %99 : vector<1x32xf32> to vector<2x32xf32>
    %102 = arith.mulf %100, %101 : vector<2x32xf32>
    %103 = arith.addf %94, %102 : vector<2x32xf32>
    %c2_i32_35 = arith.constant 2 : i32
    %104 = vector.broadcast %c2_i32_35 : i32 to vector<2x1xi32>
    %105 = arith.cmpi eq, %84, %104 : vector<2x1xi32>
    %106 = arith.extui %105 : vector<2x1xi1> to vector<2x1xi32>
    %107 = arith.sitofp %106 : vector<2x1xi32> to vector<2x1xf32>
    %c2_36 = arith.constant 2 : index
    %c0_37 = arith.constant 0 : index
    %108 = vector.load %arg4[%c2_36, %c0_37] : memref<4x32xf32, #tpu.memory_space<vmem>>, vector<1x32xf32>
    %109 = vector.broadcast %107 : vector<2x1xf32> to vector<2x32xf32>
    %110 = vector.broadcast %108 : vector<1x32xf32> to vector<2x32xf32>
    %111 = arith.mulf %109, %110 : vector<2x32xf32>
    %112 = arith.addf %103, %111 : vector<2x32xf32>
    %c3_i32_38 = arith.constant 3 : i32
    %113 = vector.broadcast %c3_i32_38 : i32 to vector<2x1xi32>
    %114 = arith.cmpi eq, %84, %113 : vector<2x1xi32>
    %115 = arith.extui %114 : vector<2x1xi1> to vector<2x1xi32>
    %116 = arith.sitofp %115 : vector<2x1xi32> to vector<2x1xf32>
    %c3_39 = arith.constant 3 : index
    %c0_40 = arith.constant 0 : index
    %117 = vector.load %arg4[%c3_39, %c0_40] : memref<4x32xf32, #tpu.memory_space<vmem>>, vector<1x32xf32>
    %118 = vector.broadcast %116 : vector<2x1xf32> to vector<2x32xf32>
    %119 = vector.broadcast %117 : vector<1x32xf32> to vector<2x32xf32>
    %120 = arith.mulf %118, %119 : vector<2x32xf32>
    %121 = arith.addf %112, %120 : vector<2x32xf32>
    %c0_41 = arith.constant 0 : index
    %c0_42 = arith.constant 0 : index
    %c64_43 = arith.constant 64 : index
    %122 = vector.load %arg5[%c0_41, %c0_42, %c64_43] : memref<1x2x128xf32, #tpu.memory_space<vmem>>, vector<1x2x32xf32>
    %123 = vector.shape_cast %122 : vector<1x2x32xf32> to vector<2x32xf32>
    %124 = vector.shape_cast %121 : vector<2x32xf32> to vector<1x2x32xf32>
    tpu.vector_store %arg5[%c0_41, %c0_42, %c64_43], %124 {strides = array<i32>} : memref<1x2x128xf32, #tpu.memory_space<vmem>>, vector<1x2x32xf32>,
    %125 = vector.extract_strided_slice %1 {offsets = [0, 3], sizes = [2, 1], strides = [1, 1]} : vector<2x4xi32> to vector<2x1xi32>
    %c0_44 = arith.constant 0 : index
    %c96 = arith.constant 96 : index
    %126 = vector.load %arg3[%c0_44, %c96] : memref<2x128xf32, #tpu.memory_space<vmem>>, vector<2x32xf32>
    %c0_i32_45 = arith.constant 0 : i32
    %127 = vector.broadcast %c0_i32_45 : i32 to vector<2x1xi32>
    %128 = arith.cmpi eq, %125, %127 : vector<2x1xi32>
    %129 = arith.extui %128 : vector<2x1xi1> to vector<2x1xi32>
    %130 = arith.sitofp %129 : vector<2x1xi32> to vector<2x1xf32>
    %c0_46 = arith.constant 0 : index
    %c0_47 = arith.constant 0 : index
    %131 = vector.load %arg4[%c0_46, %c0_47] : memref<4x32xf32, #tpu.memory_space<vmem>>, vector<1x32xf32>
    %132 = vector.broadcast %130 : vector<2x1xf32> to vector<2x32xf32>
    %133 = vector.broadcast %131 : vector<1x32xf32> to vector<2x32xf32>
    %134 = arith.mulf %132, %133 : vector<2x32xf32>
    %135 = arith.addf %126, %134 : vector<2x32xf32>
    %c1_i32_48 = arith.constant 1 : i32
    %136 = vector.broadcast %c1_i32_48 : i32 to vector<2x1xi32>
    %137 = arith.cmpi eq, %125, %136 : vector<2x1xi32>
    %138 = arith.extui %137 : vector<2x1xi1> to vector<2x1xi32>
    %139 = arith.sitofp %138 : vector<2x1xi32> to vector<2x1xf32>
    %c1_49 = arith.constant 1 : index
    %c0_50 = arith.constant 0 : index
    %140 = vector.load %arg4[%c1_49, %c0_50] : memref<4x32xf32, #tpu.memory_space<vmem>>, vector<1x32xf32>
    %141 = vector.broadcast %139 : vector<2x1xf32> to vector<2x32xf32>
    %142 = vector.broadcast %140 : vector<1x32xf32> to vector<2x32xf32>
    %143 = arith.mulf %141, %142 : vector<2x32xf32>
    %144 = arith.addf %135, %143 : vector<2x32xf32>
    %c2_i32_51 = arith.constant 2 : i32
    %145 = vector.broadcast %c2_i32_51 : i32 to vector<2x1xi32>
    %146 = arith.cmpi eq, %125, %145 : vector<2x1xi32>
    %147 = arith.extui %146 : vector<2x1xi1> to vector<2x1xi32>
    %148 = arith.sitofp %147 : vector<2x1xi32> to vector<2x1xf32>
    %c2_52 = arith.constant 2 : index
    %c0_53 = arith.constant 0 : index
    %149 = vector.load %arg4[%c2_52, %c0_53] : memref<4x32xf32, #tpu.memory_space<vmem>>, vector<1x32xf32>
    %150 = vector.broadcast %148 : vector<2x1xf32> to vector<2x32xf32>
    %151 = vector.broadcast %149 : vector<1x32xf32> to vector<2x32xf32>
    %152 = arith.mulf %150, %151 : vector<2x32xf32>
    %153 = arith.addf %144, %152 : vector<2x32xf32>
    %c3_i32_54 = arith.constant 3 : i32
    %154 = vector.broadcast %c3_i32_54 : i32 to vector<2x1xi32>
    %155 = arith.cmpi eq, %125, %154 : vector<2x1xi32>
    %156 = arith.extui %155 : vector<2x1xi1> to vector<2x1xi32>
    %157 = arith.sitofp %156 : vector<2x1xi32> to vector<2x1xf32>
    %c3_55 = arith.constant 3 : index
    %c0_56 = arith.constant 0 : index
    %158 = vector.load %arg4[%c3_55, %c0_56] : memref<4x32xf32, #tpu.memory_space<vmem>>, vector<1x32xf32>
    %159 = vector.broadcast %157 : vector<2x1xf32> to vector<2x32xf32>
    %160 = vector.broadcast %158 : vector<1x32xf32> to vector<2x32xf32>
    %161 = arith.mulf %159, %160 : vector<2x32xf32>
    %162 = arith.addf %153, %161 : vector<2x32xf32>
    %c0_57 = arith.constant 0 : index
    %c0_58 = arith.constant 0 : index
    %c96_59 = arith.constant 96 : index
    %163 = vector.load %arg5[%c0_57, %c0_58, %c96_59] : memref<1x2x128xf32, #tpu.memory_space<vmem>>, vector<1x2x32xf32>
    %164 = vector.shape_cast %163 : vector<1x2x32xf32> to vector<2x32xf32>
    %165 = vector.shape_cast %162 : vector<2x32xf32> to vector<1x2x32xf32>
    tpu.vector_store %arg5[%c0_57, %c0_58, %c96_59], %165 {strides = array<i32>} : memref<1x2x128xf32, #tpu.memory_space<vmem>>, vector<1x2x32xf32>,
    return
  }
  func.func @transform_0(%arg0: i32, %arg1: i32) -> (i32, i32, i32) {
    %c0_i32 = arith.constant 0 : i32
    %c0_i32_0 = arith.constant 0 : i32
    return %arg1, %arg0, %c0_i32 : i32, i32, i32
  }
  func.func @transform_1(%arg0: i32, %arg1: i32) -> (i32, i32) {
    %c0_i32 = arith.constant 0 : i32
    %c0_i32_0 = arith.constant 0 : i32
    return %arg0, %c0_i32 : i32, i32
  }
  func.func @transform_2(%arg0: i32, %arg1: i32) -> (i32, i32) {
    %c0_i32 = arith.constant 0 : i32
    %c0_i32_0 = arith.constant 0 : i32
    %c0_i32_1 = arith.constant 0 : i32
    return %c0_i32, %c0_i32_0 : i32, i32
  }
  func.func @transform_3(%arg0: i32, %arg1: i32) -> (i32, i32, i32) {
    %c0_i32 = arith.constant 0 : i32
    %c0_i32_0 = arith.constant 0 : i32
    return %arg1, %arg0, %c0_i32 : i32, i32, i32
  }
}

</mosaic_0001>

<bundles_post_ra>
// kernel: tpu_custom_call.1
= control target key start
LH: loop header
LB: loop body
LE: loop exit
PB: predicated region body
PF: predicated region fallthrough
CT: control target
= control target key end

     0   :  { %8 = vsyncpa [#allocation3], 0  ;;  %s1174_s0 = inlined_call_operand.hbm [shape: s32[2,2,4], index: 0, kind: input, shape index: {}]   ;;  %s1175_s1 = inlined_call_operand.hbm [shape: f32[2,128], index: 1, kind: input, shape index: {}]   ;;  %s1176_s2 = inlined_call_operand.hbm [shape: f32[4,32], index: 2, kind: input, shape index: {}]   ;;  %s1177_s3 = inlined_call_operand.hbm [shape: f32[2,2,128], index: 3, kind: output, shape index: {}]  }
   0x1   :  { %10 = vsyncpa [#allocation3 + $0x1], 0 }
   0x2   :  { %11 = vsyncpa [#allocation6], 0 }
   0x3   :  { %12 = vsyncpa [#allocation4], 0 }
   0x4   :  { %14 = vsyncpa [#allocation4 + $0x1], 0  ;;  %s977_s12 = smov 0   ;;  %s979_s13 = smov 0  }
   0x5   :  { %s981_s14 = smov 0   ;;  %s983_s15 = smov 0  }
   0x6   :  { %s985_s16 = smov 0   ;;  %s987_s17 = smov 0  }
   0x7 LB: > { %s604_s18 = sadd.s32 4294967295, %s943_s17   ;;  %s605_s19 = sadd.s32 4294967294, %s943_s17   ;;  %s943_s17 = sphi %s987_s17, %s20_s17   ;;  %s939_s16 = sphi %s985_s16, %s1200_s16   ;;  %s935_s15 = sphi %s983_s15, %s1199_s15   ;;  %s931_s14 = sphi %s981_s14, %s1198_s14   ;;  %s927_s13 = sphi %s979_s13, %s1197_s13   ;;  %s923_s12 = sphi %s977_s12, %s1196_s12  }
   0x8   : > { %p54_p0 = scmp.ne.s32.totalorder %s927_s13, %s923_s12  ;;  %p1011_p1 = scmp.eq.s32.totalorder %s604_s18, 0 }
   0x9   : > { %p1015_p2 = scmp.eq.s32.totalorder %s604_s18, 1  ;;  %p133_p3 = scmp.eq.s32.totalorder %s605_s19, 1 }
   0xa   : > { %s1182_s20 = scalar_select %p1011_p1, 1, 0 }
   0xb   : > { %s1183_s21 = scalar_select %p1015_p2, 1, 0 }
   0xc   : > { %p1021_p4 = por %p1011_p1, %p54_p0  ;;  %p606_p5 = scmp.ge.s32.totalorder %s943_s17, 1 }
   0xd   : > { %p1026_p6 = por %p133_p3, %p54_p0  ;;  %p140_p7 = scmp.lt.s32.totalorder %s943_s17, 3 }
   0xe   : > { %s1184_s22 = scalar_select %p1021_p4, 1, 0 }
   0xf   : > { %s1185_s23 = scalar_select %p1026_p6, 1, 0 }
  0x10   : > { %p1031_p8 = pnand %p606_p5, %p140_p7  ;;  %s945_s25 = smov [#allocation5]  }
  0x11   : > { %s155_s26 = sshll.u32 %s945_s25, 4  ;;  %s946_s27 = smov [#allocation7]   ;;  %s156_s26 = int_to_ptr.vmem [resolvable:$true] %s155_s26 }
  0x12   : > { %s1186_s24 = scalar_select %p1031_p8, 1, 0 }
  0x13   : > { %p653_p10 = pneg %p1031_p8  ;;  %s166_s28 = sshll.u32 %s946_s27, 4  ;;  %s167_s28 = int_to_ptr.vmem [resolvable:$true] %s166_s28 }
  0x14   : > { %s790_s30 = scalar_lea.vmem %s156_s26, 32  ;;  %p798_p5 = scmp.lt.s32.totalorder %s156_s26, %s156_s26 }
  0x15   : > { %p1040_p11 = pnand %p653_p10, %p1011_p1  ;;  %p791_p13 = scmp.ne.s32.totalorder %s156_s26, %s790_s30 }
  0x16   : > { %p799_p7 = scmp.lt.s32.totalorder %s790_s30, %s790_s30 }
  0x17   : > { %p781_p12 = pneg %p1040_p11 }
  0x18   : > { %p800_p9 = por %p799_p7, %p798_p5 }
  0x19   : > { %p793_p0 = pnand %p791_p13, %p781_p12 }
  0x1b   : > { %p794_p3 = pneg %p793_p0 }
  0x1d   : > { %p801_p6 = pnand %p800_p9, %p794_p3 }
  0x1f   : > { %804 = shalt.err (!%p801_p6)
}
  0x20   : > { %656 = dma.hbm_to_vmem [thread:$0]  (!%p1040_p11), %s1175_s1, 32, %s156_s26, [#allocation6]  }
  0x21   : > { %s816_s6 = scalar_lea.vmem %s167_s28, 64  ;;  %p824_p13 = scmp.lt.s32.totalorder %s167_s28, %s167_s28 }
  0x22   : > { %p817_p10 = scmp.ne.s32.totalorder %s167_s28, %s816_s6  ;;  %p825_p0 = scmp.lt.s32.totalorder %s816_s6, %s816_s6 }
  0x24   : > { %p819_p1 = pnand %p817_p10, %p781_p12  ;;  %p826_p8 = por %p825_p0, %p824_p13 }
  0x26   : > { %p820_p4 = pneg %p819_p1 }
  0x28   : > { %p827_p2 = pnand %p826_p8, %p820_p4 }
  0x2a   : > { %830 = shalt.err (!%p827_p2)
}
  0x2b   : > { %659 = dma.hbm_to_vmem [thread:$0]  (!%p1040_p11), %s1176_s2, 64, %s167_s28, [#allocation6]  }
  0x2c   : > { %s29_s9 = sadd.s32 1, %s939_s16  ;;  %s41_s10 = sadd.s32 1, %s931_s14 }
  0x2d   : > { %p30_p1 = scmp.ge.s32.totalorder %s29_s9, 2  ;;  %p48_p2 = scmp.ne.s32.totalorder %s931_s14, %s927_s13 }
  0x2e   : > { %p49_p4 = scmp.eq.s32.totalorder %s943_s17, 0  ;;  %p670_p6 = scmp.lt.s32.totalorder %s943_s17, 2 }
  0x2f   : > { %s1202_s9 = smov (%p30_p1, %s29_s9), 0  ;;  %p1188_p9 = scmp.ne.s32.totalorder %s1183_s21, 0 }
  0x30   : > { %p50_p8 = por %p49_p4, %p48_p2  ;;  %s36_s18 = ssub.s32 %s939_s16, %s1202_s9 }
  0x31   : > { %p1072_p12 = por %p1188_p9, %p48_p2  ;;  %s177_s19 = sand.u32 1, %s931_s14  }
  0x32   : > { %p39_p3 = scmp.eq.s32.totalorder %s36_s18, 0  ;;  %s610_s25 = sshll.u32 %s177_s19, 1 }
  0x33   : > { %s611_s26 = sshll.u32 %s939_s16, 5  ;;  %s181_s4 = scalar_lea.vmem [#allocation2], %s610_s25 }
  0x34   : > { %s1081_s27 = scalar_select %p39_p3, %s931_s14, %s41_s10  }
  0x35   : > { %s187_s30 = scalar_lea.hbm %s1174_s0, %s611_s26  ;;  %s189_s5 = sshll.u32 %s181_s4, 4  ;;  %s190_s5 = int_to_ptr.vmem [resolvable:$true] %s189_s5 }
  0x36   : > { %p1088_p11 = pnand %p670_p6, %p50_p8  ;;  %s178_s6 = scalar_lea.sflag [#allocation3], %s177_s19 }
  0x37   : > { %s844_s7 = scalar_lea.vmem %s190_s5, 32  ;;  %s947_s8 = smov [#allocation2]  }
  0x38   : > { %p833_p5 = pneg %p1088_p11  ;;  %p845_p7 = scmp.ne.s32.totalorder %s190_s5, %s844_s7 }
  0x39   : > { %s849_s10 = sshll.u32 %s947_s8, 4  ;;  %s850_s10 = int_to_ptr.vmem [resolvable:$false] %s849_s10 }
  0x3a   : > { %p847_p10 = pnand %p845_p7, %p833_p5  ;;  %s851_s18 = scalar_lea.vmem %s850_s10, 64 }
  0x3b   : > { %p852_p0 = scmp.lt.s32.totalorder %s190_s5, %s850_s10  ;;  %p853_p1 = scmp.lt.s32.totalorder %s851_s18, %s844_s7 }
  0x3c   : > { %p848_p13 = pneg %p847_p10 }
  0x3d   : > { %p854_p2 = por %p853_p1, %p852_p0 }
  0x3f   : > { %p855_p4 = pnand %p854_p2, %p848_p13 }
  0x41   : > { %858 = shalt.err (!%p855_p4)
}
  0x42   : > { %663 = dma.hbm_to_vmem [thread:$0]  (!%p1088_p11), %s187_s30, 32, %s190_s5, %s178_s6  }
  0x43   : > { %p1191_p6 = scmp.ne.s32.totalorder %s1186_s24, 0 }
  0x44   : > { %s1099_s19 = sand.u32 (!%p1191_p6), 1, %s927_s13   ;;  %p1192_p8 = scmp.ne.s32.totalorder (!%p1191_p6), %s1184_s22, 0 }
  0x45   : > { %198 = sbr.rel (%p1191_p6) target bundleno = 367 (0x16f), region = 32  ;;  %s613_s25 = sshll.u32 (!%p1191_p6), %s1099_s19, 1 }
  0x46   : > { %s201_s26 = scalar_lea.sflag (!%p1191_p6), [#allocation3], %s1099_s19  ;;  %s204_s28 = scalar_lea.vmem (!%p1191_p6), [#allocation2], %s613_s25 }
  0x4a   : > { %910 = dma.done.wait (%p1192_p8), %s201_s26, 32  }
  0x4b   : > { %912 = vsyncadd (%p1192_p8), %s201_s26, 4294967264  ;;  %p1193_p9 = scmp.ne.s32.totalorder %s1182_s20, 0 }
  0x4d   : > { %914 = dma.done.wait (%p1193_p9), [#allocation6], 96  }
  0x4e   : > { %916 = vsyncadd (%p1193_p9), [#allocation6], 4294967200  ;;  %v948_v0 = vmov 1   ;;  %v949_v1 = vmov 3   ;;  %v235_v2 = vld [vmem:[%s204_s28] sm:$0x3] }
  0x4f   : > { %732 = vset.pattern.permute.xlu0 %v948_v0  ;;  %744 = vset.pattern.permute.xlu1 %v949_v1  ;;  %vm237_vm0 = vcmp.eq.s32.totalorder %v235_v2, 0  ;;  %vm252_vm1 = vcmp.eq.s32.totalorder %v235_v2, 1  ;;  %vm267_vm2 = vcmp.eq.s32.totalorder %v235_v2, 2  ;;  %vm282_vm3 = vcmp.eq.s32.totalorder %v235_v2, 3  ;;  %v625_v12 = vld [vmem:[#allocation7] ss:$0 sm:$0xff] }
  0x50   : > { %v950_v3 = vmov 0.0   ;;  %v951_v10 = vmov 2   ;;  %v952_v11 = vmov 0   ;;  %v626_v18 = vld [vmem:[#allocation7 + $0x1] ss:$0 sm:$0xff]  ;;  %s953_s20 = smov 32  }
  0x51   : > { %v617_v4 = vsel %vm237_vm0, 1.0, %v950_v3  ;;  %v619_v5 = vsel %vm252_vm1, 1.0, %v950_v3  ;;  %v621_v7 = vsel %vm267_vm2, 1.0, %v950_v3  ;;  %v623_v8 = vsel %vm282_vm3, 1.0, %v950_v3  ;;  %s954_s22 = smov 64   ;;  %s955_s24 = smov 96  }
  0x52   : > { %v733_v6 = vpack.i.bf16 %v619_v5, %v617_v4  ;;  %v751_v9 = vpack.i.bf16 %v623_v8, %v621_v7  ;;  %v627_v29 = vld [vmem:[#allocation7 + $0x2] ss:$0 sm:$0xff]  ;;  %v628_v38 = vld [vmem:[#allocation7 + $0x3] ss:$0 sm:$0xff]  ;;  %v236_v41 = vld [vmem:[#allocation5] sm:$0x3] }
  0x53   : > { %vm297_vm4 = vcmask 254976   ;;  %s1126_s29 = scalar_lea.vmem [#allocation8], %s613_s25  ;;  %v362_v2 = vld [vmem:[#allocation5] sm:$0x3]  ;;  %vm360_vm5 = vcmask 517376   ;;  %vm423_vm6 = vcmask 779776  }
  0x54   : > { %734 = vperm.xlu0 %732, %v733_v6   ;;  %746 = vperm.xlu1 %744, %v733_v6   ;;  %s638_s30 = sshll.u32 %s935_s15, 5  ;;  %s503_s4 = sshll.u32 %s1126_s29, 4  ;;  %vm486_vm7 = vcmask 1042176   ;;  %s504_s4 = int_to_ptr.vmem [resolvable:$true] %s503_s4 }
  0x55   : > { %s501_s6 = scalar_lea.hbm %s1177_s3, %s638_s30  ;;  %s489_s7 = scalar_lea.sflag [#allocation4], %s1099_s19 }
  0x56   : > { %s859_s8 = scalar_lea.vmem %s504_s4, 32  ;;  %s956_s10 = smov [#allocation8]  }
  0x57   : > { %p860_p3 = scmp.ne.s32.totalorder %s504_s4, %s859_s8  ;;  %s863_s18 = sshll.u32 %s956_s10, 4  ;;  %s864_s18 = int_to_ptr.vmem [resolvable:$false] %s863_s18 }
  0x58   : > { %738 = vset.pattern.permute.xlu0 %v951_v10  ;;  %750 = vset.pattern.permute.xlu1 %v948_v0  ;;  %v299_v0 = vld [vmem:[#allocation5] sm:$0x3]  ;;  %s865_s15 = scalar_lea.vmem %s864_s18, 64  ;;  %p866_p7 = scmp.lt.s32.totalorder %s504_s4, %s864_s18 }
  0x59   : > { %740 = vperm.xlu0 %738, %v733_v6   ;;  %752 = vperm.xlu1 %750, %v751_v9   ;;  %p861_p11 = pnand %p860_p3, %p1072_p12  ;;  %p867_p10 = scmp.lt.s32.totalorder %s865_s15, %s859_s8 }
  0x5b   : > { %p862_p5 = pneg %p861_p11  ;;  %p868_p13 = por %p867_p10, %p866_p7 }
  0x5d   : > { %756 = vset.pattern.permute.xlu1 %v951_v10  ;;  %762 = vset.pattern.permute.xlu0 %v949_v1  ;;  %v425_v10 = vld [vmem:[#allocation5] sm:$0x3]  ;;  %p869_p0 = pnand %p868_p13, %p862_p5 }
  0x5e   : > { %758 = vperm.xlu1 %756, %v751_v9   ;;  %764 = vperm.xlu0 %762, %v751_v9  }
  0x62   : > { %768 = vset.pattern.permute.xlu1 %v952_v11 }
  0x63   : > { %770 = vperm.xlu1 %768, %v733_v6  }
  0x67   : > { %775 = vperm.xlu1 %768, %v751_v9  }
  0xcf   : > { %v735_v13 = vpop.permute.xlu0 %734  ;;  %v747_v14 = vpop.permute.xlu1 %746 }
  0xd0   : > { %v736_v15 = vunpack.i.l.bf16 %v735_v13  ;;  %v737_v16 = vunpack.i.h.bf16 %v735_v13  ;;  %v748_v25 = vunpack.i.l.bf16 %v747_v14  ;;  %v749_v28 = vunpack.i.h.bf16 %v747_v14 }
  0xd2   : > { %v309_v17 = vmul.f32 %v736_v15, %v625_v12  ;;  %v324_v22 = vmul.f32 %v737_v16, %v626_v18  ;;  %v435_v31 = vmul.f32 %v748_v25, %v625_v12  ;;  %v450_v34 = vmul.f32 %v749_v28, %v626_v18 }
  0xd4   : > { %v741_v19 = vpop.permute.xlu0 %740  ;;  %311 = vrot.lane.b32.xlu0 %v309_v17, %s953_s20  ;;  %v753_v20 = vpop.permute.xlu1 %752 }
  0xd5   : > { %v742_v21 = vunpack.i.l.bf16 %v741_v19  ;;  %v743_v23 = vunpack.i.h.bf16 %v741_v19  ;;  %v754_v26 = vunpack.i.l.bf16 %v753_v20  ;;  %v755_v35 = vunpack.i.h.bf16 %v753_v20 }
  0xd7   : > { %v372_v24 = vmul.f32 %v742_v21, %v625_v12  ;;  %v387_v27 = vmul.f32 %v743_v23, %v626_v18  ;;  %v339_v32 = vmul.f32 %v754_v26, %v627_v29  ;;  %v354_v46 = vmul.f32 %v755_v35, %v628_v38 }
  0xd8   : > { %326 = vrot.lane.b32.xlu0 %v324_v22, %s953_s20 }
  0xd9   : > { %374 = vrot.lane.b32.xlu1 %v372_v24, %s954_s22  ;;  %v759_v30 = vpop.permute.xlu1 %758  ;;  %v765_v36 = vpop.permute.xlu0 %764 }
  0xda   : > { %v760_v33 = vunpack.i.l.bf16 %v759_v30  ;;  %v766_v43 = vunpack.i.l.bf16 %v765_v36  ;;  %v761_v47 = vunpack.i.h.bf16 %v759_v30  ;;  %v767_v57 = vunpack.i.h.bf16 %v765_v36 }
  0xdc   : > { %389 = vrot.lane.b32.xlu0 %v387_v27, %s954_s22  ;;  %v402_v42 = vmul.f32 %v760_v33, %v627_v29  ;;  %v465_v52 = vmul.f32 %v766_v43, %v627_v29  ;;  %v417_v56 = vmul.f32 %v761_v47, %v628_v38  ;;  %v480_v60 = vmul.f32 %v767_v57, %v628_v38 }
  0xdd   : > { %437 = vrot.lane.b32.xlu1 %v435_v31, %s955_s24 }
  0xde   : > { %v771_v37 = vpop.permute.xlu1 %770 }
  0xdf   : > { %v773_v39 = vunpack.i.h.bf16 %v771_v37  ;;  %v772_v40 = vunpack.i.l.bf16 %v771_v37 }
  0xe0   : > { %452 = vrot.lane.b32.xlu0 %v450_v34, %s955_s24 }
  0xe1   : > { %341 = vrot.lane.b32.xlu1 %v339_v32, %s953_s20  ;;  %v265_v44 = vmul.f32 %v773_v39, %v626_v18  ;;  %v250_v45 = vmul.f32 %v772_v40, %v625_v12 }
  0xe2   : > { %v776_v48 = vpop.permute.xlu1 %775 }
  0xe3   : > { %v251_v49 = vadd.f32 %v250_v45, %v236_v41  ;;  %v778_v50 = vunpack.i.h.bf16 %v776_v48  ;;  %v777_v51 = vunpack.i.l.bf16 %v776_v48 }
  0xe4   : > { %356 = vrot.lane.b32.xlu0 %v354_v46, %s953_s20 }
  0xe5   : > { %404 = vrot.lane.b32.xlu1 %v402_v42, %s954_s22  ;;  %v266_v53 = vadd.f32 %v265_v44, %v251_v49  ;;  %v295_v54 = vmul.f32 %v778_v50, %v628_v38  ;;  %v280_v55 = vmul.f32 %v777_v51, %v627_v29 }
  0xe7   : > { %v281_v58 = vadd.f32 %v280_v55, %v266_v53 }
  0xe8   : > { %419 = vrot.lane.b32.xlu0 %v417_v56, %s954_s22 }
  0xe9   : > { %467 = vrot.lane.b32.xlu1 %v465_v52, %s955_s24  ;;  %v296_v59 = vadd.f32 %v295_v54, %v281_v58 }
  0xeb   : > { %298 = vst.msk [vmem:[%s1126_s29] sm:$0x3] %vm297_vm4, %v296_v59 }
  0xed   : > { %482 = vrot.lane.b32.xlu1 %v480_v60, %s955_s24 }
 0x146   : > { %v312_v61 = vpop.permute.xlu0 %311 }
 0x147   : > { %v314_v4 = vadd.f32 %v312_v61, %v299_v0 }
 0x14a   : > { %v327_v62 = vpop.permute.xlu0 %326 }
 0x14b   : > { %v375_v63 = vpop.permute.xlu1 %374  ;;  %v329_v5 = vadd.f32 %v327_v62, %v314_v4 }
 0x14c   : > { %v377_v6 = vadd.f32 %v375_v63, %v362_v2 }
 0x14e   : > { %v390_v1 = vpop.permute.xlu0 %389 }
 0x14f   : > { %v438_v3 = vpop.permute.xlu1 %437  ;;  %v392_v11 = vadd.f32 %v390_v1, %v377_v6 }
 0x150   : > { %v440_v15 = vadd.f32 %v438_v3, %v425_v10 }
 0x152   : > { %v453_v7 = vpop.permute.xlu0 %452 }
 0x153   : > { %v342_v8 = vpop.permute.xlu1 %341  ;;  %v455_v20 = vadd.f32 %v453_v7, %v440_v15 }
 0x154   : > { %v344_v9 = vadd.f32 %v342_v8, %v329_v5 }
 0x156   : > { %v357_v12 = vpop.permute.xlu0 %356 }
 0x157   : > { %v359_v13 = vadd.f32 %v357_v12, %v344_v9  ;;  %v405_v14 = vpop.permute.xlu1 %404 }
 0x158   : > { %v407_v16 = vadd.f32 %v405_v14, %v392_v11 }
 0x159   : > { %361 = vst.msk [vmem:[%s1126_s29] sm:$0x3] %vm360_vm5, %v359_v13 }
 0x15a   : > { %v420_v17 = vpop.permute.xlu0 %419 }
 0x15b   : > { %v422_v18 = vadd.f32 %v420_v17, %v407_v16  ;;  %v468_v19 = vpop.permute.xlu1 %467 }
 0x15c   : > { %v470_v21 = vadd.f32 %v468_v19, %v455_v20 }
 0x15d   : > { %424 = vst.msk [vmem:[%s1126_s29] sm:$0x3] %vm423_vm6, %v422_v18 }
 0x15f   : > { %v483_v22 = vpop.permute.xlu1 %482 }
 0x160   : > { %v485_v23 = vadd.f32 %v483_v22, %v470_v21 }
 0x162   : > { %487 = vst.msk [vmem:[%s1126_s29] sm:$0x3] %vm486_vm7, %v485_v23 }
 0x163   : > { %872 = shalt.err (!%p869_p0)
}
 0x164   : > { %s873_s25 = scalar_lea.hbm %s501_s6, 32  ;;  %s877_s28 = scalar_lea.hbm %s1177_s3, 64 }
 0x165   : > { %p874_p1 = scmp.ne.s32.totalorder %s501_s6, %s873_s25  ;;  %p878_p6 = scmp.lt.s32.totalorder %s501_s6, %s1177_s3 }
 0x166   : > { %p879_p8 = scmp.lt.s32.totalorder %s877_s28, %s873_s25 }
 0x167   : > { %p875_p2 = pnand %p874_p1, %p1072_p12 }
 0x168   : > { %p880_p9 = por %p879_p8, %p878_p6 }
 0x169   : > { %p876_p4 = pneg %p875_p2 }
 0x16b   : > { %p881_p3 = pnand %p880_p9, %p876_p4 }
 0x16d   : > { %884 = shalt.err (!%p881_p3)
}
 0x16e   : > { %651 = dma.vmem_to_hbm [thread:$0]  (%p1072_p12), %s504_s4, 32, %s501_s6, %s489_s7  }
 0x16f PF: > { %s515_s24 = sand.u32 1, %s923_s12   ;;  %p1194_p11 = scmp.ne.s32.totalorder %s1185_s23, 0 }
 0x170   : > { %p1195_p5 = scmp.ge.s32.totalorder %s943_s17, 2  ;;  %s516_s29 = scalar_lea.sflag [#allocation4], %s515_s24 }
 0x172   : > { %p665_p7 = pnand %p1195_p5, %p1194_p11 }
 0x174   : > { %p666_p10 = pneg %p665_p7 }
 0x176   : > { %918 = dma.done.wait (%p666_p10), %s516_s29, 32  }
 0x177   : > { %920 = vsyncadd (%p666_p10), %s516_s29, 4294967264  ;;  %s20_s17 = sadd.s32 1, %s943_s17   ;;  %s1196_s12 = smov %s927_s13 }
 0x178   : > { %p17_p13 = scmp.ge.s32.totalorder %s20_s17, 4   ;;  %s1197_s13 = smov %s931_s14 }
 0x179   : > { %s1198_s14 = smov %s1081_s27  ;;  %s1199_s15 = smov %s939_s16 }
 0x17a   : > { %s1200_s16 = smov %s1202_s9  ;;  %19 = sbr.rel (!%p17_p13) target bundleno = 7 (0x7), region = 86 }
 0x17f   :  { %521 = vsyncpa [#allocation3], 1 }
 0x180   :  { %523 = vsyncpa [#allocation3 + $0x1], 1 }
 0x181   :  { %524 = vsyncpa [#allocation6], 1 }
 0x182   :  { %525 = vsyncpa [#allocation4], 1 }
 0x183   :  { %527 = vsyncpa [#allocation4 + $0x1], 1 }

</bundles_post_ra>
